<compile_context>
chip_gen: v7x
topology: tpu7x:2x2x1
jax: 0.10.0
libtpu: 0.0.40
codegen_flags: <defaults>
</compile_context>

<pallas_src>
import functools

import jax
import jax.numpy as jnp
from jax import lax
from jax.experimental import pallas as pl
from jax.experimental.pallas import tpu as pltpu


def policy_kernel(x_ref, w1_ref, b1_ref, w2_ref, b2_ref, out_ref):
    """Forward for one batch tile in natural (batch, feature) layout.

    x_ref  : (TB, input_dim)
    w1_ref : (hidden, input_dim)   native PyTorch (out, in) layout
    b1_ref : (1, hidden)
    w2_ref : (action, hidden)
    b2_ref : (1, action)
    out_ref: (TB, action)          softmax probabilities
    """
    x = x_ref[...]

    # fc1 + ReLU: contract input_dim of x against input_dim of w1
    # (transposed-RHS dot_general -> no weight transposition needed).
    h = lax.dot_general(
        x, w1_ref[...], (((1,), (1,)), ((), ())),
        preferred_element_type=jnp.float32,
    )
    h = jnp.maximum(h + b1_ref[...], 0.0)

    # fc2: contract hidden of h against hidden of w2.
    logits = lax.dot_general(
        h, w2_ref[...], (((1,), (1,)), ((), ())),
        preferred_element_type=jnp.float32,
    )
    logits = logits + b2_ref[...]

    # Numerically stable softmax over the action axis.  Exact division (no
    # approx reciprocal): these probs feed Categorical sampling / log_prob.
    m = jnp.max(logits, axis=1, keepdims=True)
    e = jnp.exp(logits - m)
    denom = jnp.sum(e, axis=1, keepdims=True)
    out_ref[...] = (e / denom).astype(out_ref.dtype)


def _policy_call(x, w1, b1, w2, b2, block_b):
    batch, input_dim = x.shape
    hidden_dim = w1.shape[0]
    action_dim = w2.shape[0]
    out_shape = jax.ShapeDtypeStruct((batch, action_dim), jnp.float32)

    if batch <= block_b:
        # Single block, no grid: whole operands VMEM-resident, one DMA in /
        # one DMA out, zero per-step grid overhead.  This is the path every
        # realistic rollout batch takes with the default block_b.
        return pl.pallas_call(policy_kernel, out_shape=out_shape)(
            x, w1, b1, w2, b2)

    # Oversized batches: grid over the batch axis with a ragged last block
    # (no wrapper-side pad; Pallas masks out-of-range rows on the output).
    grid = (pl.cdiv(batch, block_b),)
    return pl.pallas_call(
        policy_kernel,
        out_shape=out_shape,
        grid_spec=pltpu.PrefetchScalarGridSpec(
            num_scalar_prefetch=0,
            grid=grid,
            in_specs=[
                # activations: new batch tile each step
                pl.BlockSpec((block_b, input_dim), lambda i: (i, 0)),
                # weights/biases: constant index_map -> DMA'd once, VMEM-resident
                pl.BlockSpec((hidden_dim, input_dim), lambda i: (0, 0)),
                pl.BlockSpec((1, hidden_dim), lambda i: (0, 0)),
                pl.BlockSpec((action_dim, hidden_dim), lambda i: (0, 0)),
                pl.BlockSpec((1, action_dim), lambda i: (0, 0)),
            ],
            out_specs=pl.BlockSpec((block_b, action_dim), lambda i: (i, 0)),
        ),
        compiler_params=pltpu.CompilerParams(
            # Batch steps are independent; on v7x this shards the (rare)
            # multi-step grid across the two TensorCores (no-op on v5e/v6e).
            # With block_b=8192 the step count is tiny anyway.
            dimension_semantics=("parallel",),
        ),
    )(x, w1, b1, w2, b2)


@functools.partial(jax.jit, static_argnames=("block_b",))
def policy_forward(x, w1, b1, w2, b2, block_b=8192):
    """x: (B, input_dim) f32.  Weights in native PyTorch layout:
    w1 (hidden, in), b1 (hidden,), w2 (action, hidden), b2 (action,).
    Returns (B, action) softmax probabilities (matches Policy.forward)."""
    # (H,) -> (1, H) is a metadata-only reshape; no HBM pass, no extra launch.
    return _policy_call(x, w1, b1.reshape(1, -1), w2, b2.reshape(1, -1), block_b)


def init_params(key, input_dim=4, hidden_dim=16, action_dim=2):
    """Deterministic synthetic init (PyTorch-like uniform bounds, native layout)."""
    k1, k2, k3, k4 = jax.random.split(key, 4)
    bound1 = 1.0 / float(input_dim) ** 0.5
    bound2 = 1.0 / float(hidden_dim) ** 0.5
    w1 = jax.random.uniform(k1, (hidden_dim, input_dim), jnp.float32, -bound1, bound1)
    b1 = jax.random.uniform(k2, (hidden_dim,), jnp.float32, -bound1, bound1)
    w2 = jax.random.uniform(k3, (action_dim, hidden_dim), jnp.float32, -bound2, bound2)
    b2 = jax.random.uniform(k4, (action_dim,), jnp.float32, -bound2, bound2)
    return w1, b1, w2, b2


def reference_forward(x, w1, b1, w2, b2):
    hp = jax.lax.Precision.HIGHEST
    h = jnp.maximum(jnp.dot(x, w1.T, precision=hp) + b1[None, :], 0.0)
    logits = jnp.dot(h, w2.T, precision=hp) + b2[None, :]
    return jax.nn.softmax(logits, axis=1)


# TODO(synk): Policy.act() (Categorical sampling + log_prob) is host-side RL glue,
# not part of the forward pass; it is intentionally not implemented as a kernel.

if __name__ == "__main__":
    key = jax.random.PRNGKey(0)
    kx, kp, kb = jax.random.split(key, 3)

    input_dim, hidden_dim, action_dim = 4, 16, 2
    w1, b1, w2, b2 = init_params(kp, input_dim, hidden_dim, action_dim)

    # act()-style tiny batch: single block, no grid, no wrapper ops.
    x_small = jax.random.normal(kx, (2, input_dim), jnp.float32)
    probs_small = jax.block_until_ready(policy_forward(x_small, w1, b1, w2, b2))

    # Rollout batch: with block_b=8192 this is ONE block (no grid, no pad,
    # no transpose/slice ops around the kernel).
    x_big = jax.random.normal(kb, (1300, input_dim), jnp.float32)
    probs_big = jax.block_until_ready(policy_forward(x_big, w1, b1, w2, b2))

    # Explicitly exercise the gridded ragged-last-block path (grid=(3,),
    # last block only 276/512 rows valid).
    probs_grid = jax.block_until_ready(
        policy_forward(x_big, w1, b1, w2, b2, block_b=512))

    ok = True
    for x_in, probs in ((x_small, probs_small),
                        (x_big, probs_big),
                        (x_big, probs_grid)):
        ref = reference_forward(x_in, w1, b1, w2, b2)
        ok &= probs.shape == (x_in.shape[0], action_dim)
        ok &= bool(jnp.allclose(probs, ref, atol=1e-4, rtol=1e-4))
        ok &= bool(jnp.allclose(jnp.sum(probs, axis=1), 1.0, atol=1e-5))
    assert ok
    print("KERNEL_OK")
</pallas_src>

<mosaic_0001>
module attributes {stable_mosaic.version = 11 : i64} {
  func.func @policy_kernel(%arg0: memref<2x4xf32, #tpu.memory_space<vmem>>, %arg1: memref<16x4xf32, #tpu.memory_space<vmem>>, %arg2: memref<1x16xf32, #tpu.memory_space<vmem>>, %arg3: memref<2x16xf32, #tpu.memory_space<vmem>>, %arg4: memref<1x2xf32, #tpu.memory_space<vmem>>, %arg5: memref<2x2xf32, #tpu.memory_space<vmem>>) attributes {dimension_semantics = [], scalar_prefetch = 0 : i64, scratch_operands = 0 : i64, tpu.core_type = #tpu.core_type<tc>} {
    %c0 = arith.constant 0 : index
    %c0_0 = arith.constant 0 : index
    %0 = vector.load %arg0[%c0, %c0_0] : memref<2x4xf32, #tpu.memory_space<vmem>>, vector<2x4xf32>
    %c0_1 = arith.constant 0 : index
    %c0_2 = arith.constant 0 : index
    %1 = vector.load %arg1[%c0_1, %c0_2] : memref<16x4xf32, #tpu.memory_space<vmem>>, vector<16x4xf32>
    %cst = arith.constant dense<0.000000e+00> : vector<2x16xf32>
    %2 = tpu.matmul %0, %1, %cst {dimension_numbers = #tpu.dot_dimension_numbers<[1], [1], [0], [0], [0, 0, 1, 0], [], []>} : vector<2x4xf32>, vector<16x4xf32>, vector<2x16xf32> -> vector<2x16xf32>
    %c0_3 = arith.constant 0 : index
    %c0_4 = arith.constant 0 : index
    %3 = vector.load %arg2[%c0_3, %c0_4] : memref<1x16xf32, #tpu.memory_space<vmem>>, vector<1x16xf32>
    %4 = vector.broadcast %3 : vector<1x16xf32> to vector<2x16xf32>
    %5 = arith.addf %2, %4 : vector<2x16xf32>
    %cst_5 = arith.constant 0.000000e+00 : f32
    %6 = vector.broadcast %cst_5 : f32 to vector<2x16xf32>
    %7 = arith.maximumf %5, %6 : vector<2x16xf32>
    %c0_6 = arith.constant 0 : index
    %c0_7 = arith.constant 0 : index
    %8 = vector.load %arg3[%c0_6, %c0_7] : memref<2x16xf32, #tpu.memory_space<vmem>>, vector<2x16xf32>
    %cst_8 = arith.constant dense<0.000000e+00> : vector<2x2xf32>
    %9 = tpu.matmul %7, %8, %cst_8 {dimension_numbers = #tpu.dot_dimension_numbers<[1], [1], [0], [0], [0, 0, 1, 0], [], []>} : vector<2x16xf32>, vector<2x16xf32>, vector<2x2xf32> -> vector<2x2xf32>
    %c0_9 = arith.constant 0 : index
    %c0_10 = arith.constant 0 : index
    %10 = vector.load %arg4[%c0_9, %c0_10] : memref<1x2xf32, #tpu.memory_space<vmem>>, vector<1x2xf32>
    %11 = vector.broadcast %10 : vector<1x2xf32> to vector<2x2xf32>
    %12 = arith.addf %9, %11 : vector<2x2xf32>
    %cst_11 = arith.constant dense<0xFF800000> : vector<2xf32>
    %13 = vector.multi_reduction <maximumf>, %12, %cst_11 [1] : vector<2x2xf32> to vector<2xf32>
    %14 = vector.shape_cast %13 : vector<2xf32> to vector<2x1xf32>
    %15 = vector.broadcast %14 : vector<2x1xf32> to vector<2x2xf32>
    %16 = arith.subf %12, %15 : vector<2x2xf32>
    %17 = math.exp %16 : vector<2x2xf32>
    %cst_12 = arith.constant dense<0.000000e+00> : vector<2xf32>
    %18 = vector.multi_reduction <add>, %17, %cst_12 [1] : vector<2x2xf32> to vector<2xf32>
    %19 = vector.shape_cast %18 : vector<2xf32> to vector<2x1xf32>
    %20 = vector.broadcast %19 : vector<2x1xf32> to vector<2x2xf32>
    %21 = arith.divf %17, %20 : vector<2x2xf32>
    %c0_13 = arith.constant 0 : index
    %c0_14 = arith.constant 0 : index
    %22 = vector.load %arg5[%c0_13, %c0_14] : memref<2x2xf32, #tpu.memory_space<vmem>>, vector<2x2xf32>
    tpu.vector_store %arg5[%c0_13, %c0_14], %21 {strides = array<i32>} : memref<2x2xf32, #tpu.memory_space<vmem>>, vector<2x2xf32>,
    return
  }
}

</mosaic_0001>

<bundles_post_ra>
// kernel: policy_forward.1
= control target key start
LH: loop header
LB: loop body
LE: loop exit
PB: predicated region body
PF: predicated region fallthrough
CT: control target
= control target key end

     0   :  { %vm31_vm0 = vcmask 31744   ;;  %v284_v2 = vmov 0.0|0.0   ;;  %vm285_vm2 = vmmov 0   ;;  %v286_v4 = vmov 0.0   ;;  %s351_s0 = inlined_call_operand.vmem [shape: f32[2,4], index: 0, kind: input, shape index: {}]   ;;  %s352_s1 = inlined_call_operand.vmem [shape: f32[16,4], index: 1, kind: input, shape index: {}]   ;;  %s353_s2 = inlined_call_operand.vmem [shape: f32[1,16], index: 2, kind: input, shape index: {}]   ;;  %s354_s3 = inlined_call_operand.vmem [shape: f32[2,16], index: 3, kind: input, shape index: {}]   ;;  %s355_s4 = inlined_call_operand.vmem [shape: f32[1,2], index: 4, kind: input, shape index: {}]   ;;  %s356_s5 = inlined_call_operand.hbm [shape: f32[2,2], index: 5, kind: output, shape index: {}]  }
   0x1   :  { %v22_v0 = vld [vmem:[%s352_s1] sm:$0xff]  ;;  %v23_v1 = vld [vmem:[%s352_s1 + $0x8] sm:$0xff]  ;;  %248 = vmatprep.subr.bf16.mxu0 %v284_v2  ;;  %vm250_vm1 = vmpackc.low %vm31_vm0, %vm31_vm0  ;;  %240 = vmatprep.mubr.msk.f32.mxu0 %vm285_vm2, %v286_v4 }
   0x2   :  { %v249_v3 = vpack.c.bf16 %v23_v1, %v22_v0  ;;  %243 = vmatprep.subr.mxu1 %v286_v4  ;;  %245 = vmatprep.mubr.msk.f32.mxu1 %vm285_vm2, %v286_v4 }
   0x3   :  { %10 = vsyncpa [#allocation3], 0  ;;  %v21_v5 = vld [vmem:[%s351_s0] sm:$0x3]  ;;  %vm120_vm3 = vcmask 130048   ;;  %vm197_vm4 = vcmask 9216  }
   0x4   :  { %251 = vmatpush3.bf16.xpose.msk.msra.mxu0 %vm250_vm1, %v249_v3  ;;  %v112_v6 = vld [vmem:[%s354_s3] sm:$0x3]  ;;  %s287_s0 = smov [#allocation2]  }
   0x5   :  { %244 = vmatpush3.xpose.msk.msra.mxu1 %vm120_vm3, %v112_v6  ;;  %v224_v7 = vld [vmem:[%s353_s2] ss:$0 sm:$0xff]  ;;  %s216_s2 = sshll.u32 %s287_s0, 4  ;;  %s217_s2 = int_to_ptr.vmem [resolvable:$true] %s216_s2 }
   0x6   :  { %v228_v12 = vld [vmem:[%s355_s4] ss:$0 sm:$0xff]  ;;  %s260_s3 = scalar_lea.vmem %s217_s2, 32  ;;  %p265_p1 = scmp.lt.s32.totalorder %s217_s2, %s217_s2 }
   0x7   :  { %p261_p0 = scmp.ne.s32.totalorder %s217_s2, %s260_s3  ;;  %p266_p2 = scmp.lt.s32.totalorder %s260_s3, %s260_s3 }
   0x9   :  { %p267_p3 = por %p266_p2, %p265_p1 }
   0xb   :  { %241 = vmatmul.mubr.msk.f32.vlgmr.msra.gmra.mrb[0].mxu0 %vm31_vm0, %v21_v5  ;;  %p268_p4 = pnand %p267_p3, %p261_p0 }
  0xde   :  { %v107_v8 = vpop.f32.mrb[0].mxu0 }
  0xdf   :  { %v108_v9 = vadd.f32 %v224_v7, %v107_v8  ;;  %v242_v10 = vpop.f32.mrb[1].mxu0 }
  0xe1   :  { %v111_v11 = vmax.f32 %v108_v9, 0.0 }
  0xe3   :  { %246 = vmatmul.mubr.msk.f32.vlgmr.msra.gmra.mrb[0].mxu1 %vm120_vm3, %v111_v11 }
 0x1b6   :  { %v193_v13 = vpop.f32.mrb[0].mxu1 }
 0x1b7   :  { %v194_v14 = vadd.f32 %v228_v12, %v193_v13  ;;  %v247_v15 = vpop.f32.mrb[1].mxu1 }
 0x1b9   :  { %v198_v16 = vsel %vm197_vm4, %v194_v14, -inf }
 0x1ba   :  { %199 = vmax.xlane.f32.xlu0 %v198_v16 }
 0x247   :  { %v200_v17 = vpop.xlane.xlu0 %199 }
 0x248   :  { %v201_v18 = vsub.f32 %v194_v14, %v200_v17 }
 0x24a   :  { %v202_v19 = vmul.f32 1.442695, %v201_v18 }
 0x24c   :  { %256 = vpow2.f32 %v202_v19 }
 0x256   :  { %v257_v20 = vpop.eup %256 }
 0x257   :  { %v204_v21 = vsel %vm197_vm4, %v257_v20, 0.0 }
 0x258   :  { %205 = vadd.xlane.f32.xlu0 %v204_v21 }
 0x2e5   :  { %v206_v22 = vpop.xlane.xlu0 %205 }
 0x2e6   :  { %258 = vrcp.f32 %v206_v22 }
 0x2f0   :  { %v259_v23 = vpop.eup %258 }
 0x2f1   :  { %v208_v24 = vmul.f32 %v259_v23, %v257_v20 }
 0x2f3   :  { %209 = vst.msk [vmem:[#allocation2] sm:$0x3] %vm197_vm4, %v208_v24 }
 0x2f4   :  { %271 = shalt.err (!%p268_p4)
}
 0x2f5   :  { %s272_s30 = scalar_lea.hbm %s356_s5, 32 }
 0x2f6   :  { %p273_p5 = scmp.ne.s32.totalorder %s356_s5, %s272_s30  ;;  %p276_p6 = scmp.lt.u32.totalorder %s272_s30, %s356_s5 }
 0x2f8   :  { %p278_p7 = pnand %p276_p6, %p273_p5 }
 0x2fa   :  { %281 = shalt.err (!%p278_p7)
}
 0x2fb   :  { %219 = dma.vmem_to_hbm [thread:$0]  %s217_s2, 32, %s356_s5, [#allocation3]  }
 0x2fc   :  { %282 = dma.done.wait [#allocation3], 32  }
 0x2fd   :  { %283 = vsyncadd [#allocation3], 4294967264 }
 0x2fe   :  { %223 = vsyncpa [#allocation3], 1 }

</bundles_post_ra>
